<compile_context>
chip_gen: v7x
topology: tpu7x:2x2x1
jax: 0.10.0
libtpu: 0.0.40
codegen_flags: <defaults>
</compile_context>

<pallas_src>
import jax
import jax.numpy as jnp
from jax.experimental import pallas as pl
from jax.experimental.pallas import tpu as pltpu


def _round_up(x: int, m: int) -> int:
    return ((x + m - 1) // m) * m


def _cdiv(a: int, b: int) -> int:
    return (a + b - 1) // b


# --------------------------------------------------------------------------
# Kernels
# --------------------------------------------------------------------------
def _beta_kernel(x_ref, w_ref, b_ref, o_ref):
    # Single K block: matmul (MXU, f32 accumulation) + bias + ReLU fused.
    y = jnp.dot(x_ref[...], w_ref[...], preferred_element_type=jnp.float32)
    o_ref[...] = jnp.maximum(y + b_ref[...], 0.0).astype(o_ref.dtype)


def _beta_kernel_kacc(x_ref, w_ref, b_ref, o_ref, acc_ref):
    # K-tiled variant: grid = (j over N, i over M, k over K), k innermost.
    k = pl.program_id(2)

    @pl.when(k == 0)
    def _():
        acc_ref[...] = jnp.zeros_like(acc_ref)

    acc_ref[...] += jnp.dot(x_ref[...], w_ref[...],
                            preferred_element_type=jnp.float32)

    @pl.when(k == pl.num_programs(2) - 1)
    def _():
        o_ref[...] = jnp.maximum(acc_ref[...] + b_ref[...], 0.0).astype(o_ref.dtype)


# --------------------------------------------------------------------------
# Wrapper: parameters are prepared once, per-call work is minimal.
# --------------------------------------------------------------------------
class BetaForward:
    """relu(state @ w_bfc + b_bfc) with init-time parameter padding."""

    _SMALL_WEIGHT_BYTES = 2 * 1024 * 1024   # weight below this -> fast path
    _SMALL_BATCH = 256                      # ... together with B below this

    def __init__(self, w_bfc, b_bfc, *, cast_to_bf16=None):
        # w_bfc: (input_dim, hidden) == transpose of PyTorch bfc.weight
        # b_bfc: (hidden,)
        K, N = w_bfc.shape
        assert b_bfc.shape == (N,)
        self.K, self.N = int(K), int(N)

        if cast_to_bf16 is None:
            # bf16 MXU feed pays off once the kernel is weight-HBM / MXU bound.
            cast_to_bf16 = (self.K * self.N) >= (1 << 21)
        self.cast_to_bf16 = bool(cast_to_bf16)
        self.in_dtype = jnp.bfloat16 if self.cast_to_bf16 else jnp.float32
        isz = 2 if self.cast_to_bf16 else 4
        self._isz = isz

        # ---- generation-aware VMEM budget --------------------------------
        try:
            vmem_cap = int(pltpu.get_tpu_info().vmem_capacity_bytes)
        except Exception:
            vmem_cap = 64 * 1024 * 1024          # conservative (v7x-sized)
        self._vmem_cap = vmem_cap
        # ~half of physical VMEM: ~60 MiB on v5e/v6e (128 MiB), ~28 MiB on v7x.
        self._budget = max(min(vmem_cap // 2 - 4 * 1024 * 1024,
                               60 * 1024 * 1024),
                           12 * 1024 * 1024)

        # ---- small / fast path params (no padding at all) ----------------
        self._small_weight = (self.K * self.N * isz) <= self._SMALL_WEIGHT_BYTES
        self._w_small = jnp.asarray(w_bfc).astype(self.in_dtype)
        self._b_small = jnp.asarray(b_bfc).reshape(1, self.N).astype(jnp.float32)

        # ---- tiled path: choose tn / (optional) tk, pad params ONCE -------
        Np128 = _round_up(self.N, 128)
        w_budget = self._budget // 2             # share for weight (x2 buffers)

        tn = min(Np128, 2048)
        if Np128 >= 256:
            tn = _round_up(tn, 256) if tn % 256 else tn
        while tn > 256 and 2 * self.K * tn * isz > w_budget:
            tn -= 256
        tn = max(tn, min(Np128, 128))

        if 2 * self.K * tn * isz > w_budget:
            # Even a narrow column slab of the weight does not fit: tile K too.
            tk = max(512, (w_budget // (2 * tn * isz)) // 128 * 128)
            grid_k = _cdiv(_round_up(self.K, 128), tk)
            tk = _round_up(_cdiv(_round_up(self.K, 128), grid_k), 128)
            K_al = grid_k * tk
            self.tile_k, self.grid_k = tk, grid_k
        else:
            self.tile_k, self.grid_k = None, 1
            K_al = self.K                        # no K padding needed
        self.K_al = K_al

        # Balanced N tiles: over-pad N by < 128 per tile.
        grid_n = _cdiv(Np128, tn)
        tn = _round_up(_cdiv(Np128, grid_n), 128)
        Np = grid_n * tn
        self.grid_n, self.tn, self.Np = grid_n, tn, Np

        # Init-time (once-only) weight / bias padding, built directly in dtype.
        w = jnp.asarray(w_bfc).astype(self.in_dtype)
        pad_k, pad_n = K_al - self.K, Np - self.N
        if pad_k or pad_n:
            w = jnp.pad(w, ((0, pad_k), (0, pad_n)))
        self._w = w
        b = jnp.asarray(b_bfc).reshape(1, self.N).astype(jnp.float32)
        if pad_n:
            b = jnp.pad(b, ((0, 0), (0, pad_n)))
        self._b = b

        # Per-row VMEM cost for the per-call tile_m choice.
        k_eff = self.tile_k if self.tile_k is not None else K_al
        self._row_bytes = (2 * k_eff * isz            # x tile (double-buffered)
                           + 2 * tn * 4               # out tile (double-buffered)
                           + (tn * 4 if self.tile_k else 0))   # acc scratch
        self._w_resident_bytes = 2 * k_eff * tn * isz + 2 * tn * 4

    # ----------------------------------------------------------------------
    def __call__(self, state):
        B, K = state.shape
        assert K == self.K
        x = state if state.dtype == self.in_dtype else state.astype(self.in_dtype)

        # ---- tiny problems: one block, zero wrapper padding ---------------
        if self._small_weight and B <= self._SMALL_BATCH:
            ws = ((B * K + K * self.N) * self._isz
                  + self.N * 4 + B * self.N * 4)
            return pl.pallas_call(
                _beta_kernel,
                out_shape=jax.ShapeDtypeStruct((B, self.N), jnp.float32),
                cost_estimate=pl.CostEstimate(
                    flops=2 * B * K * self.N, transcendentals=0,
                    bytes_accessed=ws),
            )(x, self._w_small, self._b_small)

        # ---- tiled path ----------------------------------------------------
        gm = 16 if self.in_dtype == jnp.bfloat16 else 8     # sublane granule
        B_al = _round_up(B, gm)

        avail = max(self._budget - self._w_resident_bytes, self._row_bytes * gm)
        tile_m = min(B_al, 1024, max((avail // self._row_bytes) // gm * gm, gm))

        # Keep >= 2 parallel grid steps once the batch is big (v7x megacore).
        if self.grid_n == 1 and B_al >= 512:
            tile_m = min(tile_m, _round_up(_cdiv(B_al, 2), gm))

        # Balanced batch tiles: over-pad by at most one granule per tile.
        grid_m = _cdiv(B_al, tile_m)
        tile_m = _round_up(_cdiv(B_al, grid_m), gm)
        Bp = grid_m * tile_m

        pad_b, pad_k = Bp - B, self.K_al - self.K
        if pad_b or pad_k:
            x = jnp.pad(x, ((0, pad_b), (0, pad_k)))

        tn, Np = self.tn, self.Np
        ws = self._w_resident_bytes + tile_m * self._row_bytes
        vmem_limit = int(min(max(ws + (4 << 20), 16 << 20),
                             self._vmem_cap - (2 << 20)))

        if self.tile_k is None:
            grid = (self.grid_n, grid_m)                 # j (weight) outermost
            in_specs = [
                pl.BlockSpec((tile_m, self.K_al), lambda j, i: (i, 0)),   # x
                pl.BlockSpec((self.K_al, tn), lambda j, i: (0, j)),       # W
                pl.BlockSpec((1, tn), lambda j, i: (0, j)),               # b
            ]
            out_spec = pl.BlockSpec((tile_m, tn), lambda j, i: (i, j))
            kernel = _beta_kernel
            scratch = ()
            dims = ("parallel", "parallel")
        else:
            tk = self.tile_k
            grid = (self.grid_n, grid_m, self.grid_k)    # k reduction innermost
            in_specs = [
                pl.BlockSpec((tile_m, tk), lambda j, i, k: (i, k)),       # x
                pl.BlockSpec((tk, tn), lambda j, i, k: (k, j)),           # W
                pl.BlockSpec((1, tn), lambda j, i, k: (0, j)),            # b
            ]
            out_spec = pl.BlockSpec((tile_m, tn), lambda j, i, k: (i, j))
            kernel = _beta_kernel_kacc
            scratch = [pltpu.VMEM((tile_m, tn), jnp.float32)]
            dims = ("parallel", "parallel", "arbitrary")

        out = pl.pallas_call(
            kernel,
            out_shape=jax.ShapeDtypeStruct((Bp, Np), jnp.float32),
            grid=grid,
            in_specs=in_specs,
            out_specs=out_spec,
            scratch_shapes=scratch,
            compiler_params=pltpu.CompilerParams(
                dimension_semantics=dims,
                vmem_limit_bytes=vmem_limit),
            cost_estimate=pl.CostEstimate(
                flops=2 * Bp * self.K_al * Np,
                transcendentals=0,
                bytes_accessed=(Bp * self.K_al * self._isz * self.grid_n
                                + self.K_al * Np * self._isz
                                + Np * 4 + Bp * Np * 4)),
        )(x, self._w, self._b)

        if Bp != B or Np != self.N:
            out = out[:B, :self.N]
        return out


# --------------------------------------------------------------------------
if __name__ == "__main__":
    # Module config (small, consistent with nn.Linear(input_dim, hidden_size)).
    batch = 8
    input_dim = 32
    hidden_size = 64
    action_dim = 4  # used only by softmax_fc / get_log_probs, not forward()

    key = jax.random.PRNGKey(0)
    k_x, k_w, k_b, k_w2, k_b2, k_x2, k_w3, k_b3 = jax.random.split(key, 8)

    # Deterministic parameter init (PyTorch-style uniform bound 1/sqrt(fan_in)).
    bound1 = 1.0 / jnp.sqrt(input_dim)
    w_bfc_pt = jax.random.uniform(
        k_w, (hidden_size, input_dim), jnp.float32, -bound1, bound1
    )  # PyTorch layout (out, in)
    b_bfc = jax.random.uniform(k_b, (hidden_size,), jnp.float32, -bound1, bound1)
    # softmax_fc params exist in __init__ but are unused by forward().
    bound2 = 1.0 / jnp.sqrt(hidden_size)
    _ = jax.random.uniform(k_w2, (action_dim, hidden_size), jnp.float32,
                           -bound2, bound2)
    _ = jax.random.uniform(k_b2, (action_dim,), jnp.float32, -bound2, bound2)

    state = jax.random.normal(k_x, (batch, input_dim), jnp.float32)
    w_bfc = w_bfc_pt.T  # (input_dim, hidden_size)

    # --- nominal shape: small fast path (no padding, single block) ---------
    model = BetaForward(w_bfc, b_bfc)
    fwd = jax.jit(model.__call__)
    out = jax.block_until_ready(fwd(state))
    ref = jnp.maximum(state @ w_bfc + b_bfc, 0.0)
    assert out.shape == (batch, hidden_size)
    assert jnp.allclose(out, ref, atol=1e-4, rtol=1e-4)

    # --- awkward shape: exercises the tiled path (pad/slice guards, grid) ---
    B2, K2, N2 = 300, 96, 200
    b1 = 1.0 / jnp.sqrt(K2)
    w2 = jax.random.uniform(k_w3, (K2, N2), jnp.float32, -b1, b1)
    bb2 = jax.random.uniform(k_b3, (N2,), jnp.float32, -b1, b1)
    x2 = jax.random.normal(k_x2, (B2, K2), jnp.float32)
    model2 = BetaForward(w2, bb2, cast_to_bf16=False)
    out2 = jax.block_until_ready(jax.jit(model2.__call__)(x2))
    ref2 = jnp.maximum(x2 @ w2 + bb2, 0.0)
    assert out2.shape == (B2, N2)
    assert jnp.allclose(out2, ref2, atol=2e-4, rtol=2e-4)

    print("KERNEL_OK")
</pallas_src>

<mosaic_0001>
module attributes {stable_mosaic.version = 11 : i64} {
  func.func @_beta_kernel(%arg0: memref<8x32xf32, #tpu.memory_space<vmem>>, %arg1: memref<32x64xf32, #tpu.memory_space<vmem>>, %arg2: memref<1x64xf32, #tpu.memory_space<vmem>>, %arg3: memref<8x64xf32, #tpu.memory_space<vmem>>) attributes {dimension_semantics = [], scalar_prefetch = 0 : i64, scratch_operands = 0 : i64, tpu.core_type = #tpu.core_type<tc>} {
    %c0 = arith.constant 0 : index
    %c0_0 = arith.constant 0 : index
    %0 = vector.load %arg0[%c0, %c0_0] : memref<8x32xf32, #tpu.memory_space<vmem>>, vector<8x32xf32>
    %c0_1 = arith.constant 0 : index
    %c0_2 = arith.constant 0 : index
    %1 = vector.load %arg1[%c0_1, %c0_2] : memref<32x64xf32, #tpu.memory_space<vmem>>, vector<32x64xf32>
    %cst = arith.constant dense<0.000000e+00> : vector<8x64xf32>
    %2 = tpu.matmul %0, %1, %cst {dimension_numbers = #tpu.dot_dimension_numbers<[1], [0], [0], [1], [0, 0, 1, 1], [], []>} : vector<8x32xf32>, vector<32x64xf32>, vector<8x64xf32> -> vector<8x64xf32>
    %c0_3 = arith.constant 0 : index
    %c0_4 = arith.constant 0 : index
    %3 = vector.load %arg2[%c0_3, %c0_4] : memref<1x64xf32, #tpu.memory_space<vmem>>, vector<1x64xf32>
    %4 = vector.broadcast %3 : vector<1x64xf32> to vector<8x64xf32>
    %5 = arith.addf %2, %4 : vector<8x64xf32>
    %cst_5 = arith.constant 0.000000e+00 : f32
    %6 = vector.broadcast %cst_5 : f32 to vector<8x64xf32>
    %7 = arith.maximumf %5, %6 : vector<8x64xf32>
    %c0_6 = arith.constant 0 : index
    %c0_7 = arith.constant 0 : index
    %8 = vector.load %arg3[%c0_6, %c0_7] : memref<8x64xf32, #tpu.memory_space<vmem>>, vector<8x64xf32>
    tpu.vector_store %arg3[%c0_6, %c0_7], %7 {strides = array<i32>} : memref<8x64xf32, #tpu.memory_space<vmem>>, vector<8x64xf32>,
    return
  }
}

</mosaic_0001>

<bundles_post_ra>
// kernel: a_call__.1
= control target key start
LH: loop header
LB: loop body
LE: loop exit
PB: predicated region body
PF: predicated region fallthrough
CT: control target
= control target key end

     0   :  { %8 = vsyncpa [#allocation3], 0  ;;  %s324_s0 = inlined_call_operand.hbm [shape: f32[8,32], index: 0, kind: input, shape index: {}]   ;;  %s325_s1 = inlined_call_operand.hbm [shape: f32[32,64], index: 1, kind: input, shape index: {}]   ;;  %s326_s2 = inlined_call_operand.vmem [shape: f32[1,64], index: 2, kind: input, shape index: {}]   ;;  %s327_s3 = inlined_call_operand.hbm [shape: f32[8,64], index: 3, kind: output, shape index: {}]  }
   0x1   :  { %9 = vsyncpa [#allocation6], 0 }
   0x2   :  { %10 = vsyncpa [#allocation4], 0  ;;  %s250_s12 = smov [#allocation2]   ;;  %s251_s14 = smov [#allocation5]  }
   0x3   :  { %s17_s13 = sshll.u32 %s250_s12, 4  ;;  %s26_s15 = sshll.u32 %s251_s14, 4  ;;  %s18_s13 = int_to_ptr.vmem [resolvable:$true] %s17_s13  ;;  %s278_s15 = int_to_ptr.vmem [resolvable:$true] %s26_s15 }
   0x4   :  { %s178_s18 = scalar_lea.hbm %s324_s0, 128 }
   0x5   :  { %p179_p0 = scmp.ne.s32.totalorder %s324_s0, %s178_s18  ;;  %p182_p1 = scmp.lt.u32.totalorder %s178_s18, %s324_s0 }
   0x7   :  { %p184_p2 = pnand %p182_p1, %p179_p0 }
   0x9   :  { %187 = shalt.err (!%p184_p2)
}
   0xa   :  { %s188_s23 = scalar_lea.vmem %s18_s13, 128  ;;  %p193_p4 = scmp.lt.s32.totalorder %s18_s13, %s18_s13 }
   0xb   :  { %p189_p3 = scmp.ne.s32.totalorder %s18_s13, %s188_s23  ;;  %p194_p5 = scmp.lt.s32.totalorder %s188_s23, %s188_s23 }
   0xd   :  { %p195_p6 = por %p194_p5, %p193_p4 }
   0xf   :  { %p196_p7 = pnand %p195_p6, %p189_p3 }
  0x11   :  { %199 = shalt.err (!%p196_p7)
}
  0x12   :  { %20 = dma.hbm_to_vmem [thread:$0]  %s324_s0, 128, %s18_s13, [#allocation3]  }
  0x13   :  { %s200_s28 = scalar_lea.hbm %s325_s1, 512 }
  0x14   :  { %p201_p8 = scmp.ne.s32.totalorder %s325_s1, %s200_s28  ;;  %p204_p9 = scmp.lt.u32.totalorder %s200_s28, %s325_s1 }
  0x16   :  { %p206_p10 = pnand %p204_p9, %p201_p8 }
  0x18   :  { %209 = shalt.err (!%p206_p10)
}
  0x19   :  { %s210_s6 = scalar_lea.vmem %s278_s15, 512  ;;  %p215_p12 = scmp.lt.s32.totalorder %s278_s15, %s278_s15 }
  0x1a   :  { %p211_p11 = scmp.ne.s32.totalorder %s278_s15, %s210_s6  ;;  %p216_p13 = scmp.lt.s32.totalorder %s210_s6, %s210_s6 }
  0x1c   :  { %p217_p0 = por %p216_p13, %p215_p12 }
  0x1e   :  { %p218_p1 = pnand %p217_p0, %p211_p11 }
  0x20   :  { %221 = shalt.err (!%p218_p1)
}
  0x21   :  { %s252_s0 = smov 128   ;;  %s253_s7 = smov 8  }
  0x22   :  { %32 = dma.hbm_to_vmem [thread:$0]  %s325_s1, 512, %s278_s15, [#allocation6], %s252_s0, %s252_s0, %s253_s7  }
  0x23   :  { %244 = dma.done.wait [#allocation3], 128  }
  0x24   :  { %245 = vsyncadd [#allocation3], 4294967168 }
  0x25   :  { %246 = dma.done.wait [#allocation6], 512  }
  0x26   :  { %247 = vsyncadd [#allocation6], 4294966784  ;;  %v254_v0 = vmov 0.0|0.0   ;;  %vm255_vm0 = vmmov 0   ;;  %v256_v1 = vmov 0.0   ;;  %v42_v2 = vld [vmem:[#allocation5] sm:$0xff] }
  0x27   :  { %164 = vmatprep.subr.bf16.mxu0 %v254_v0  ;;  %161 = vmatprep.mubr.msk.f32.mxu0 %vm255_vm0, %v256_v1  ;;  %v43_v3 = vld [vmem:[#allocation5 + $0x8] sm:$0xff]  ;;  %v44_v4 = vld [vmem:[#allocation5 + $0x10] sm:$0xff]  ;;  %v45_v6 = vld [vmem:[#allocation5 + $0x18] sm:$0xff]  ;;  %vm53_vm1 = vcmask 261120   ;;  %s257_s11 = smov [#allocation7]   ;;  %vm128_vm2 = vcmask 523264  }
  0x28   :  { %v165_v5 = vpack.c.bf16 %v43_v3, %v42_v2  ;;  %v168_v7 = vpack.c.bf16 %v45_v6, %v44_v4  ;;  %v41_v8 = vld [vmem:[#allocation2] sm:$0xff]  ;;  %s136_s12 = sshll.u32 %s257_s11, 4  ;;  %s137_s12 = int_to_ptr.vmem [resolvable:$true] %s136_s12 }
  0x29   :  { %v146_v9 = vld [vmem:[%s326_s2] ss:$0 sm:$0xff]  ;;  %s222_s13 = scalar_lea.vmem %s137_s12, 128  ;;  %p227_p3 = scmp.lt.s32.totalorder %s137_s12, %s137_s12 }
  0x2a   :  { %166 = vmatpush3.bf16.msra.mxu0 %v165_v5  ;;  %p223_p2 = scmp.ne.s32.totalorder %s137_s12, %s222_s13  ;;  %p228_p4 = scmp.lt.s32.totalorder %s222_s13, %s222_s13 }
  0x2b   :  { %167 = vmatprep.subr.bf16.mxu0 %v254_v0 }
  0x2c   :  { %p229_p5 = por %p228_p4, %p227_p3 }
  0x2e   :  { %169 = vmatpush3.bf16.msra.mxu0 %v168_v7  ;;  %p230_p6 = pnand %p229_p5, %p223_p2 }
  0x31   :  { %162 = vmatmul.mubr.msk.f32.vlgmr.msra.gmra.mrb[0].mxu0 %vm53_vm1, %v41_v8 }
 0x104   :  { %v123_v10 = vpop.f32.mrb[0].mxu0 }
 0x105   :  { %v124_v11 = vadd.f32 %v146_v9, %v123_v10  ;;  %v163_v12 = vpop.f32.mrb[1].mxu0 }
 0x107   :  { %v127_v13 = vmax.f32 %v124_v11, 0.0 }
 0x109   :  { %129 = vst.msk [vmem:[#allocation7] sm:$0xff] %vm128_vm2, %v127_v13 }
 0x10a   :  { %233 = shalt.err (!%p230_p6)
}
 0x10b   :  { %s234_s2 = scalar_lea.hbm %s327_s3, 128 }
 0x10c   :  { %p235_p7 = scmp.ne.s32.totalorder %s327_s3, %s234_s2  ;;  %p238_p8 = scmp.lt.u32.totalorder %s234_s2, %s327_s3 }
 0x10e   :  { %p240_p9 = pnand %p238_p8, %p235_p7 }
 0x110   :  { %243 = shalt.err (!%p240_p9)
}
 0x111   :  { %139 = dma.vmem_to_hbm [thread:$0]  %s137_s12, 128, %s327_s3, [#allocation4]  }
 0x112   :  { %248 = dma.done.wait [#allocation4], 128  }
 0x113   :  { %249 = vsyncadd [#allocation4], 4294967168 }
 0x114   :  { %143 = vsyncpa [#allocation3], 1 }
 0x115   :  { %144 = vsyncpa [#allocation6], 1 }
 0x116   :  { %145 = vsyncpa [#allocation4], 1 }

</bundles_post_ra>
